<compile_context>
chip_gen: v5e
topology: v5e:2x2
jax: 0.10.0
libtpu: 0.0.40
codegen_flags: <defaults>
</compile_context>

<pallas_src>
import jax
import jax.numpy as jnp
from jax.experimental import pallas as pl
from jax.experimental.pallas import tpu as pltpu


def _dma_copy_kernel(src_ref, dst_ref, sem):
    # Single whole-array HBM->HBM descriptor copy; runs at HBM roofline on
    # v5e / v6e / v7x for any embedding size.
    cp = pltpu.make_async_copy(src_ref, dst_ref, sem)
    cp.start()
    cp.wait()


def domain_embedding_forward(embedding: jax.Array, *, force_kernel: bool = False) -> jax.Array:
    """Pallas equivalent of DomainEmbedding.forward().

    embedding:    (embedding_dim,) parameter.
    force_kernel: if False (default) return the parameter zero-copy — the
                  strictly optimal forward for a pure parameter read-out.
                  If True, materialize a copy through a single gridless
                  HBM->HBM DMA Pallas kernel.
    returns:      (embedding_dim,) array with identical values/dtype.
    """
    if not force_kernel:
        # Optimal path: forward() is a pure parameter read-out.
        return embedding

    d = embedding.shape[0]

    # Lane-dense 2-D presentation: (rows, 128) when possible, else (1, D)
    # (full-extent block, so no (8,128) divisibility constraint applies).
    if d % 128 == 0:
        x2d = embedding.reshape(d // 128, 128)
    else:
        x2d = embedding.reshape(1, d)

    out2d = pl.pallas_call(
        _dma_copy_kernel,
        out_shape=jax.ShapeDtypeStruct(x2d.shape, embedding.dtype),
        in_specs=[pl.BlockSpec(memory_space=pl.ANY)],
        out_specs=pl.BlockSpec(memory_space=pl.ANY),
        scratch_shapes=[pltpu.SemaphoreType.DMA(())],
    )(x2d)

    return out2d.reshape(d)


if __name__ == "__main__":
    key = jax.random.PRNGKey(0)
    k0, k1 = jax.random.split(key)

    # Small, lane-partial case (embedding_dim = 32, as in the module spec).
    embedding_dim = 32
    embedding = jax.random.normal(k0, (embedding_dim,), dtype=jnp.float32)

    # Default (optimal) path: zero-copy return of the parameter.
    out_fast = jax.block_until_ready(domain_embedding_forward(embedding))
    assert out_fast.shape == (embedding_dim,)
    assert out_fast.dtype == jnp.float32
    assert bool(jnp.array_equal(out_fast, embedding))

    # Explicit Pallas kernel path (single gridless HBM->HBM DMA).
    out_kernel = jax.block_until_ready(
        domain_embedding_forward(embedding, force_kernel=True)
    )
    assert out_kernel.shape == (embedding_dim,)
    assert out_kernel.dtype == jnp.float32
    assert bool(jnp.array_equal(out_kernel, embedding))

    # Lane-dense case (embedding_dim multiple of 128) exercising the
    # (rows, 128) layout path through the same DMA kernel.
    embedding_dim2 = 256
    embedding2 = jax.random.normal(k1, (embedding_dim2,), dtype=jnp.float32)
    out2 = jax.block_until_ready(
        domain_embedding_forward(embedding2, force_kernel=True)
    )
    assert out2.shape == (embedding_dim2,)
    assert bool(jnp.array_equal(out2, embedding2))

    print("KERNEL_OK")
</pallas_src>

<mosaic_0001>
module attributes {stable_mosaic.version = 11 : i64} {
  func.func @_dma_copy_kernel(%arg0: memref<1x32xf32, #tpu.memory_space<any>>, %arg1: memref<1x32xf32, #tpu.memory_space<any>>, %arg2: memref<!tpu.dma_semaphore, #tpu.memory_space<semaphore_mem>>) attributes {dimension_semantics = [], scalar_prefetch = 0 : i64, scratch_operands = 1 : i64, tpu.core_type = #tpu.core_type<tc>} {
    tpu.enqueue_dma source(%arg0 : memref<1x32xf32, #tpu.memory_space<any>>) target(%arg1 : memref<1x32xf32, #tpu.memory_space<any>>) target_semaphore(%arg2 : memref<!tpu.dma_semaphore, #tpu.memory_space<semaphore_mem>>)
    tpu.wait_dma2 semaphore(%arg2 : memref<!tpu.dma_semaphore, #tpu.memory_space<semaphore_mem>>) src(%arg0 : memref<1x32xf32, #tpu.memory_space<any>>) dst(%arg1 : memref<1x32xf32, #tpu.memory_space<any>>)
    return
  }
}

</mosaic_0001>

<bundles_post_ra>
// kernel: tpu_custom_call.1
= control target key start
LH: loop header
LB: loop body
LE: loop exit
PB: predicated region body
PF: predicated region fallthrough
CT: control target
= control target key end

     0   :  { %s32_s12 = smov [#allocation2]   ;;  %s33_s13 = smov [#allocation3]   ;;  %s51_s0 = inlined_call_operand.hbm [shape: f32[1,32], index: 0, kind: input, shape index: {}]   ;;  %s52_s1 = inlined_call_operand.hbm [shape: f32[1,32], index: 1, kind: output, shape index: {}]  }
   0x1   :  { %s10_s8 = sshll.u32 %s51_s0, 4  ;;  %s12_s11 = sshll.u32 %s52_s1, 4  ;;  %s11_s8 = int_to_ptr.hbm [resolvable:$true] %s10_s8  ;;  %s13_s11 = int_to_ptr.hbm [resolvable:$true] %s12_s11 }
   0x2   :  { %s34_s14 = smov 0  }
   0x3   :  { %16 = dma.general %s11_s8, 16, %s13_s11, %s32_s12, %s33_s13, [#allocation4], %s34_s14, 0  }
   0x4   :  { %30 = dma.done.wait [#allocation2], 16 }
   0x5   :  { %31 = vsyncadd [#allocation2], 4294967280 }
   0x6   :  { %20 = vsyncmov [#allocation2] }
   0x9   :  { %s21_s15 = vpop.sfrf %20 }
   0xa   :  { %p26_p0 = scmp.ne.s32.totalorder %s21_s15, 0 }
   0xc   :  { %25 = shalt.err (%p26_p0)  }

</bundles_post_ra>
